<compile_context>
chip_gen: v6e
topology: v6e:2x2x1
jax: 0.10.0
libtpu: 0.0.40
codegen_flags: <defaults>
</compile_context>

<pallas_src>
import functools
import math

import jax
import jax.numpy as jnp
from jax.experimental import pallas as pl
from jax.experimental.pallas import tpu as pltpu


# ---------------------------------------------------------------------------
# Kernel
# ---------------------------------------------------------------------------
def mha_kernel(q_ref, k_ref, v_ref,
               wq_ref, bq_ref, wk_ref, bk_ref, wv_ref, bv_ref,
               wo_ref, bo_ref,
               o_ref,
               kh_ref, vh_ref, *, num_heads, d_k):
    H = num_heads
    inv_scale = 1.0 / math.sqrt(d_k)

    def bcast_heads(x):            # (R, D) f32 -> (H, R, D) bf16 (MXU operand)
        return jnp.broadcast_to(x.astype(jnp.bfloat16)[None], (H,) + x.shape)

    # K/V projections depend only on the batch index: compute once per batch
    # element (first query tile) and keep the bf16 results in VMEM scratch.
    @pl.when(pl.program_id(1) == 0)
    def _():
        kh = jnp.einsum('hsd,hdk->hsk', bcast_heads(k_ref[0]), wk_ref[...],
                        preferred_element_type=jnp.float32) + bk_ref[...]
        vh = jnp.einsum('hsd,hdk->hsk', bcast_heads(v_ref[0]), wv_ref[...],
                        preferred_element_type=jnp.float32) + bv_ref[...]
        kh_ref[...] = kh.astype(jnp.bfloat16)
        vh_ref[...] = vh.astype(jnp.bfloat16)

    # Q projection for this query tile: (H, TQ, d_k), f32 accumulation.
    qh = jnp.einsum('htd,hdk->htk', bcast_heads(q_ref[0]), wq_ref[...],
                    preferred_element_type=jnp.float32) + bq_ref[...]
    # Fold 1/sqrt(d_k) into Q (O(TQ*D) muls instead of O(H*TQ*S) on scores).
    qh = (qh * inv_scale).astype(jnp.bfloat16)

    # Attention scores batched over heads: (H, TQ, S), f32 accumulation.
    scores = jnp.einsum('htk,hsk->hts', qh, kh_ref[...],
                        preferred_element_type=jnp.float32)

    # Numerically stable softmax; EUP reciprocal instead of a VALU divide.
    m = jnp.max(scores, axis=-1, keepdims=True)
    e = jnp.exp(scores - m)
    attn = (e * pl.reciprocal(jnp.sum(e, axis=-1, keepdims=True),
                              approx=True)).astype(jnp.bfloat16)

    # Context per head: (H, TQ, d_k)
    ctx = jnp.einsum('hts,hsk->htk', attn, vh_ref[...],
                     preferred_element_type=jnp.float32)

    # Output projection: per-head contribution, summed over heads (== Wo on
    # the concatenated context, without any lane-dim concatenate/reshape).
    out_h = jnp.einsum('htk,hkm->htm', ctx.astype(jnp.bfloat16), wo_ref[...],
                       preferred_element_type=jnp.float32)          # (H, TQ, D)
    o_ref[0] = (jnp.sum(out_h, axis=0) + bo_ref[...]).astype(o_ref.dtype)


# ---------------------------------------------------------------------------
# Wrapper
# ---------------------------------------------------------------------------
def _vmem_limit_bytes(S, TQ, D, H, d_k):
    """Rough per-step VMEM estimate (padded to (8,128) tiles) with headroom."""
    def tile(rows, cols, bpe):
        r = max(8, -(-rows // 8) * 8)
        c = max(128, -(-cols // 128) * 128)
        return r * c * bpe
    f32, bf16 = 4, 2
    total = 0
    # Double-buffered activation / output blocks.
    total += 2 * (2 * tile(TQ, D, f32) + 2 * tile(S, D, f32))
    # Weights & biases (assume the pipeline double-buffers them too).
    total += 2 * H * (3 * tile(D, d_k, bf16) + tile(d_k, D, bf16)
                      + 3 * tile(1, d_k, f32))
    total += 2 * tile(1, D, f32)
    # Single-buffered K/V-head scratch.
    total += 2 * H * tile(S, d_k, bf16)
    # In-kernel intermediates (broadcast x, q/k/v heads, scores, attn, ctx).
    total += H * (3 * tile(S, D, bf16) + 4 * tile(S, d_k, f32)
                  + 2 * tile(TQ, S, f32) + tile(TQ, D, f32)
                  + tile(TQ, d_k, f32))
    return int(min(max(2 * total, 16 << 20), 64 << 20))


def pack_params(params, num_heads):
    """Convert (in,out) full matrices into per-head bf16 slabs for the kernel."""
    D = params["wq"].shape[0]
    d_k = D // num_heads

    def split_w(w):                      # (D, D) -> (H, D, d_k)
        return jnp.transpose(w.reshape(D, num_heads, d_k),
                             (1, 0, 2)).astype(jnp.bfloat16)

    def split_b(b):                      # (D,) -> (H, 1, d_k), f32
        return b.reshape(num_heads, 1, d_k).astype(jnp.float32)

    return dict(
        wq=split_w(params["wq"]), bq=split_b(params["bq"]),
        wk=split_w(params["wk"]), bk=split_b(params["bk"]),
        wv=split_w(params["wv"]), bv=split_b(params["bv"]),
        wo=params["wo"].reshape(num_heads, d_k, D).astype(jnp.bfloat16),
        bo=params["bo"].reshape(1, D).astype(jnp.float32),
    )


def multi_head_attention(q_sbd, k_sbd, v_sbd, params, *, num_heads, q_tile=128):
    """q/k/v: (S, B, d_model) float32, matching the PyTorch layout."""
    S, B, D = q_sbd.shape
    assert D % num_heads == 0
    d_k = D // num_heads

    TQ = S if S <= q_tile else (q_tile // 8) * 8   # full seq, or 8-multiple tile
    p = pack_params(params, num_heads)

    # TODO(synk): keep activations in (B, S, D) upstream to avoid these
    # full-tensor HBM transposes outside the kernel.
    q_bsd = jnp.transpose(q_sbd, (1, 0, 2))
    k_bsd = jnp.transpose(k_sbd, (1, 0, 2))
    v_bsd = jnp.transpose(v_sbd, (1, 0, 2))

    def const(shape):
        # Constant-index weight blocks (re-fetch elided by the pipeline).
        return pl.BlockSpec(shape, lambda b, t: tuple(0 for _ in shape))

    in_specs = [
        pl.BlockSpec((1, TQ, D), lambda b, t: (b, t, 0)),   # q (seq-tiled)
        pl.BlockSpec((1, S, D), lambda b, t: (b, 0, 0)),    # k (full seq)
        pl.BlockSpec((1, S, D), lambda b, t: (b, 0, 0)),    # v (full seq)
        const((num_heads, D, d_k)), const((num_heads, 1, d_k)),   # wq, bq
        const((num_heads, D, d_k)), const((num_heads, 1, d_k)),   # wk, bk
        const((num_heads, D, d_k)), const((num_heads, 1, d_k)),   # wv, bv
        const((num_heads, d_k, D)), const((1, D)),                # wo, bo
    ]

    kernel = functools.partial(mha_kernel, num_heads=num_heads, d_k=d_k)

    out_bsd = pl.pallas_call(
        kernel,
        out_shape=jax.ShapeDtypeStruct((B, S, D), jnp.float32),
        grid_spec=pltpu.PrefetchScalarGridSpec(
            num_scalar_prefetch=0,
            grid=(B, pl.cdiv(S, TQ)),
            in_specs=in_specs,
            out_specs=pl.BlockSpec((1, TQ, D), lambda b, t: (b, t, 0)),
            scratch_shapes=[
                pltpu.VMEM((num_heads, S, d_k), jnp.bfloat16),   # K heads
                pltpu.VMEM((num_heads, S, d_k), jnp.bfloat16),   # V heads
            ]),
        compiler_params=pltpu.CompilerParams(
            # Query-tile axis carries the K/V scratch -> sequential.
            dimension_semantics=("parallel", "arbitrary"),
            vmem_limit_bytes=_vmem_limit_bytes(S, TQ, D, num_heads, d_k)),
    )(q_bsd, k_bsd, v_bsd,
      p["wq"], p["bq"], p["wk"], p["bk"], p["wv"], p["bv"], p["wo"], p["bo"])

    return jnp.transpose(out_bsd, (1, 0, 2))   # back to (S, B, D)


# ---------------------------------------------------------------------------
# Parameters + pure-JAX reference
# ---------------------------------------------------------------------------
def init_params(key, d_model):
    """Synthetic nn.Linear-style parameters, stored pre-transposed (in, out)."""
    ks = jax.random.split(key, 4)

    def lin(k, fan_in, fan_out):
        bound = 1.0 / math.sqrt(fan_in)
        kw, kb = jax.random.split(k)
        w = jax.random.uniform(kw, (fan_in, fan_out), jnp.float32, -bound, bound)
        b = jax.random.uniform(kb, (fan_out,), jnp.float32, -bound, bound)
        return w, b

    wq, bq = lin(ks[0], d_model, d_model)
    wk, bk = lin(ks[1], d_model, d_model)
    wv, bv = lin(ks[2], d_model, d_model)
    wo, bo = lin(ks[3], d_model, d_model)
    return dict(wq=wq, bq=bq, wk=wk, bk=bk, wv=wv, bv=bv, wo=wo, bo=bo)


def mha_reference(q_sbd, k_sbd, v_sbd, p, num_heads):
    """f32 reference matching the PyTorch forward exactly."""
    S, B, D = q_sbd.shape
    d_k = D // num_heads
    Q = q_sbd @ p["wq"] + p["bq"]
    K = k_sbd @ p["wk"] + p["bk"]
    V = v_sbd @ p["wv"] + p["bv"]

    def split(t):   # (S,B,D) -> (B,H,S,d_k)
        return t.reshape(S, B, num_heads, d_k).transpose(1, 2, 0, 3)

    Qh, Kh, Vh = split(Q), split(K), split(V)
    scores = jnp.einsum('bhsd,bhtd->bhst', Qh, Kh) / math.sqrt(d_k)
    attn = jax.nn.softmax(scores, axis=-1)
    ctx = jnp.einsum('bhst,bhtd->bhsd', attn, Vh)
    ctx = ctx.transpose(2, 0, 1, 3).reshape(S, B, D)
    return ctx @ p["wo"] + p["bo"]


# ---------------------------------------------------------------------------
if __name__ == "__main__":
    S, B, D = 8, 2, 32
    NUM_HEADS = 4

    key = jax.random.PRNGKey(0)
    kq, kk, kv, kp = jax.random.split(key, 4)
    q = jax.random.normal(kq, (S, B, D), jnp.float32)
    k = jax.random.normal(kk, (S, B, D), jnp.float32)
    v = jax.random.normal(kv, (S, B, D), jnp.float32)
    params = init_params(kp, D)

    out = multi_head_attention(q, k, v, params, num_heads=NUM_HEADS)
    jax.block_until_ready(out)
    assert out.shape == (S, B, D)

    ref = mha_reference(q, k, v, params, NUM_HEADS)
    # bf16 matmul operands + approx reciprocal => loose tolerance vs f32 ref.
    assert jnp.allclose(out, ref, atol=5e-2, rtol=5e-2), \
        float(jnp.max(jnp.abs(out - ref)))
    print("KERNEL_OK")
</pallas_src>

<mosaic_0001>
module attributes {stable_mosaic.version = 11 : i64} {
  func.func @mha_kernel(%arg0: i32, %arg1: i32, %arg2: memref<1x8x32xf32, #tpu.memory_space<vmem>>, %arg3: memref<1x8x32xf32, #tpu.memory_space<vmem>>, %arg4: memref<1x8x32xf32, #tpu.memory_space<vmem>>, %arg5: memref<4x32x8xbf16, #tpu.memory_space<vmem>>, %arg6: memref<4x1x8xf32, #tpu.memory_space<vmem>>, %arg7: memref<4x32x8xbf16, #tpu.memory_space<vmem>>, %arg8: memref<4x1x8xf32, #tpu.memory_space<vmem>>, %arg9: memref<4x32x8xbf16, #tpu.memory_space<vmem>>, %arg10: memref<4x1x8xf32, #tpu.memory_space<vmem>>, %arg11: memref<4x8x32xbf16, #tpu.memory_space<vmem>>, %arg12: memref<1x32xf32, #tpu.memory_space<vmem>>, %arg13: memref<1x8x32xf32, #tpu.memory_space<vmem>>, %arg14: memref<4x8x8xbf16, #tpu.memory_space<vmem>>, %arg15: memref<4x8x8xbf16, #tpu.memory_space<vmem>>) attributes {dimension_semantics = [#tpu.dimension_semantics<parallel>, #tpu.dimension_semantics<arbitrary>], iteration_bounds = array<i64: 2, 1>, scalar_prefetch = 0 : i64, scratch_operands = 2 : i64, tpu.core_type = #tpu.core_type<tc>, window_params = [{transform_indices = @transform_0, window_bounds = array<i64: 1, 8, 32>}, {transform_indices = @transform_1, window_bounds = array<i64: 1, 8, 32>}, {transform_indices = @transform_2, window_bounds = array<i64: 1, 8, 32>}, {pipeline_mode = #tpu.pipeline_mode<synchronous>, transform_indices = @transform_3, window_bounds = array<i64: 4, 32, 8>}, {pipeline_mode = #tpu.pipeline_mode<synchronous>, transform_indices = @transform_4, window_bounds = array<i64: 4, 1, 8>}, {pipeline_mode = #tpu.pipeline_mode<synchronous>, transform_indices = @transform_5, window_bounds = array<i64: 4, 32, 8>}, {pipeline_mode = #tpu.pipeline_mode<synchronous>, transform_indices = @transform_6, window_bounds = array<i64: 4, 1, 8>}, {pipeline_mode = #tpu.pipeline_mode<synchronous>, transform_indices = @transform_7, window_bounds = array<i64: 4, 32, 8>}, {pipeline_mode = #tpu.pipeline_mode<synchronous>, transform_indices = @transform_8, window_bounds = array<i64: 4, 1, 8>}, {pipeline_mode = #tpu.pipeline_mode<synchronous>, transform_indices = @transform_9, window_bounds = array<i64: 4, 8, 32>}, {pipeline_mode = #tpu.pipeline_mode<synchronous>, transform_indices = @transform_10, window_bounds = array<i64: 1, 32>}, {transform_indices = @transform_11, window_bounds = array<i64: 1, 8, 32>}]} {
    %c0_i32 = arith.constant 0 : i32
    %0 = arith.cmpi eq, %arg1, %c0_i32 : i32
    %1 = arith.extui %0 : i1 to i32
    %c0_i32_0 = arith.constant 0 : i32
    %2 = arith.cmpi ne, %1, %c0_i32_0 : i32
    scf.if %2 {
      %c0_30 = arith.constant 0 : index
      %c0_31 = arith.constant 0 : index
      %c0_32 = arith.constant 0 : index
      %42 = vector.load %arg3[%c0_30, %c0_31, %c0_32] : memref<1x8x32xf32, #tpu.memory_space<vmem>>, vector<1x8x32xf32>
      %43 = vector.shape_cast %42 : vector<1x8x32xf32> to vector<8x32xf32>
      %44 = arith.truncf %43 : vector<8x32xf32> to vector<8x32xbf16>
      %45 = vector.shape_cast %44 : vector<8x32xbf16> to vector<1x8x32xbf16>
      %46 = vector.shape_cast %45 : vector<1x8x32xbf16> to vector<1x8x32xbf16>
      %47 = vector.broadcast %46 : vector<1x8x32xbf16> to vector<4x8x32xbf16>
      %c0_33 = arith.constant 0 : index
      %c0_34 = arith.constant 0 : index
      %c0_35 = arith.constant 0 : index
      %48 = vector.load %arg7[%c0_33, %c0_34, %c0_35] : memref<4x32x8xbf16, #tpu.memory_space<vmem>>, vector<4x32x8xbf16>
      "tpu.trace_start"() <{level = 10 : i32, message = "hsd,hdk->hsk"}> : () -> ()
      %cst_36 = arith.constant dense<0.000000e+00> : vector<4x8x8xf32>
      %49 = tpu.matmul %47, %48, %cst_36 {dimension_numbers = #tpu.dot_dimension_numbers<[2], [1], [1], [2], [0, 0, 0, 1, 1, 2], [0], [0]>} : vector<4x8x32xbf16>, vector<4x32x8xbf16>, vector<4x8x8xf32> -> vector<4x8x8xf32>
      "tpu.trace_stop"() : () -> ()
      %c0_37 = arith.constant 0 : index
      %c0_38 = arith.constant 0 : index
      %c0_39 = arith.constant 0 : index
      %50 = vector.load %arg8[%c0_37, %c0_38, %c0_39] : memref<4x1x8xf32, #tpu.memory_space<vmem>>, vector<4x1x8xf32>
      %51 = vector.broadcast %50 : vector<4x1x8xf32> to vector<4x8x8xf32>
      %52 = arith.addf %49, %51 : vector<4x8x8xf32>
      %c0_40 = arith.constant 0 : index
      %c0_41 = arith.constant 0 : index
      %c0_42 = arith.constant 0 : index
      %53 = vector.load %arg4[%c0_40, %c0_41, %c0_42] : memref<1x8x32xf32, #tpu.memory_space<vmem>>, vector<1x8x32xf32>
      %54 = vector.shape_cast %53 : vector<1x8x32xf32> to vector<8x32xf32>
      %55 = arith.truncf %54 : vector<8x32xf32> to vector<8x32xbf16>
      %56 = vector.shape_cast %55 : vector<8x32xbf16> to vector<1x8x32xbf16>
      %57 = vector.shape_cast %56 : vector<1x8x32xbf16> to vector<1x8x32xbf16>
      %58 = vector.broadcast %57 : vector<1x8x32xbf16> to vector<4x8x32xbf16>
      %c0_43 = arith.constant 0 : index
      %c0_44 = arith.constant 0 : index
      %c0_45 = arith.constant 0 : index
      %59 = vector.load %arg9[%c0_43, %c0_44, %c0_45] : memref<4x32x8xbf16, #tpu.memory_space<vmem>>, vector<4x32x8xbf16>
      "tpu.trace_start"() <{level = 10 : i32, message = "hsd,hdk->hsk"}> : () -> ()
      %cst_46 = arith.constant dense<0.000000e+00> : vector<4x8x8xf32>
      %60 = tpu.matmul %58, %59, %cst_46 {dimension_numbers = #tpu.dot_dimension_numbers<[2], [1], [1], [2], [0, 0, 0, 1, 1, 2], [0], [0]>} : vector<4x8x32xbf16>, vector<4x32x8xbf16>, vector<4x8x8xf32> -> vector<4x8x8xf32>
      "tpu.trace_stop"() : () -> ()
      %c0_47 = arith.constant 0 : index
      %c0_48 = arith.constant 0 : index
      %c0_49 = arith.constant 0 : index
      %61 = vector.load %arg10[%c0_47, %c0_48, %c0_49] : memref<4x1x8xf32, #tpu.memory_space<vmem>>, vector<4x1x8xf32>
      %62 = vector.broadcast %61 : vector<4x1x8xf32> to vector<4x8x8xf32>
      %63 = arith.addf %60, %62 : vector<4x8x8xf32>
      %64 = arith.truncf %52 : vector<4x8x8xf32> to vector<4x8x8xbf16>
      %c0_50 = arith.constant 0 : index
      %c0_51 = arith.constant 0 : index
      %c0_52 = arith.constant 0 : index
      %65 = vector.load %arg14[%c0_50, %c0_51, %c0_52] : memref<4x8x8xbf16, #tpu.memory_space<vmem>>, vector<4x8x8xbf16>
      tpu.vector_store %arg14[%c0_50, %c0_51, %c0_52], %64 {strides = array<i32>} : memref<4x8x8xbf16, #tpu.memory_space<vmem>>, vector<4x8x8xbf16>,
      %66 = arith.truncf %63 : vector<4x8x8xf32> to vector<4x8x8xbf16>
      %c0_53 = arith.constant 0 : index
      %c0_54 = arith.constant 0 : index
      %c0_55 = arith.constant 0 : index
      %67 = vector.load %arg15[%c0_53, %c0_54, %c0_55] : memref<4x8x8xbf16, #tpu.memory_space<vmem>>, vector<4x8x8xbf16>
      tpu.vector_store %arg15[%c0_53, %c0_54, %c0_55], %66 {strides = array<i32>} : memref<4x8x8xbf16, #tpu.memory_space<vmem>>, vector<4x8x8xbf16>,
    } else {
    }
    %c0 = arith.constant 0 : index
    %c0_1 = arith.constant 0 : index
    %c0_2 = arith.constant 0 : index
    %3 = vector.load %arg2[%c0, %c0_1, %c0_2] : memref<1x8x32xf32, #tpu.memory_space<vmem>>, vector<1x8x32xf32>
    %4 = vector.shape_cast %3 : vector<1x8x32xf32> to vector<8x32xf32>
    %5 = arith.truncf %4 : vector<8x32xf32> to vector<8x32xbf16>
    %6 = vector.shape_cast %5 : vector<8x32xbf16> to vector<1x8x32xbf16>
    %7 = vector.shape_cast %6 : vector<1x8x32xbf16> to vector<1x8x32xbf16>
    %8 = vector.broadcast %7 : vector<1x8x32xbf16> to vector<4x8x32xbf16>
    %c0_3 = arith.constant 0 : index
    %c0_4 = arith.constant 0 : index
    %c0_5 = arith.constant 0 : index
    %9 = vector.load %arg5[%c0_3, %c0_4, %c0_5] : memref<4x32x8xbf16, #tpu.memory_space<vmem>>, vector<4x32x8xbf16>
    "tpu.trace_start"() <{level = 10 : i32, message = "htd,hdk->htk"}> : () -> ()
    %cst = arith.constant dense<0.000000e+00> : vector<4x8x8xf32>
    %10 = tpu.matmul %8, %9, %cst {dimension_numbers = #tpu.dot_dimension_numbers<[2], [1], [1], [2], [0, 0, 0, 1, 1, 2], [0], [0]>} : vector<4x8x32xbf16>, vector<4x32x8xbf16>, vector<4x8x8xf32> -> vector<4x8x8xf32>
    "tpu.trace_stop"() : () -> ()
    %c0_6 = arith.constant 0 : index
    %c0_7 = arith.constant 0 : index
    %c0_8 = arith.constant 0 : index
    %11 = vector.load %arg6[%c0_6, %c0_7, %c0_8] : memref<4x1x8xf32, #tpu.memory_space<vmem>>, vector<4x1x8xf32>
    %12 = vector.broadcast %11 : vector<4x1x8xf32> to vector<4x8x8xf32>
    %13 = arith.addf %10, %12 : vector<4x8x8xf32>
    %cst_9 = arith.constant 0.353553385 : f32
    %14 = vector.broadcast %cst_9 : f32 to vector<4x8x8xf32>
    %15 = arith.mulf %13, %14 : vector<4x8x8xf32>
    %16 = arith.truncf %15 : vector<4x8x8xf32> to vector<4x8x8xbf16>
    %c0_10 = arith.constant 0 : index
    %c0_11 = arith.constant 0 : index
    %c0_12 = arith.constant 0 : index
    %17 = vector.load %arg14[%c0_10, %c0_11, %c0_12] : memref<4x8x8xbf16, #tpu.memory_space<vmem>>, vector<4x8x8xbf16>
    "tpu.trace_start"() <{level = 10 : i32, message = "htk,hsk->hts"}> : () -> ()
    %cst_13 = arith.constant dense<0.000000e+00> : vector<4x8x8xf32>
    %18 = tpu.matmul %16, %17, %cst_13 {dimension_numbers = #tpu.dot_dimension_numbers<[2], [2], [1], [1], [0, 0, 0, 1, 1, 1], [0], [0]>} : vector<4x8x8xbf16>, vector<4x8x8xbf16>, vector<4x8x8xf32> -> vector<4x8x8xf32>
    "tpu.trace_stop"() : () -> ()
    %cst_14 = arith.constant dense<0xFF800000> : vector<4x8xf32>
    %19 = vector.multi_reduction <maximumf>, %18, %cst_14 [2] : vector<4x8x8xf32> to vector<4x8xf32>
    %20 = vector.shape_cast %19 : vector<4x8xf32> to vector<4x8x1xf32>
    %21 = vector.broadcast %20 : vector<4x8x1xf32> to vector<4x8x8xf32>
    %22 = arith.subf %18, %21 : vector<4x8x8xf32>
    %23 = math.exp %22 : vector<4x8x8xf32>
    %cst_15 = arith.constant dense<0.000000e+00> : vector<4x8xf32>
    %24 = vector.multi_reduction <add>, %23, %cst_15 [2] : vector<4x8x8xf32> to vector<4x8xf32>
    %25 = vector.shape_cast %24 : vector<4x8xf32> to vector<4x8x1xf32>
    %26 = tpu.reciprocal %25 {approx = true} : vector<4x8x1xf32> -> vector<4x8x1xf32>
    %27 = vector.broadcast %26 : vector<4x8x1xf32> to vector<4x8x8xf32>
    %28 = arith.mulf %23, %27 : vector<4x8x8xf32>
    %29 = arith.truncf %28 : vector<4x8x8xf32> to vector<4x8x8xbf16>
    %c0_16 = arith.constant 0 : index
    %c0_17 = arith.constant 0 : index
    %c0_18 = arith.constant 0 : index
    %30 = vector.load %arg15[%c0_16, %c0_17, %c0_18] : memref<4x8x8xbf16, #tpu.memory_space<vmem>>, vector<4x8x8xbf16>
    "tpu.trace_start"() <{level = 10 : i32, message = "hts,hsk->htk"}> : () -> ()
    %cst_19 = arith.constant dense<0.000000e+00> : vector<4x8x8xf32>
    %31 = tpu.matmul %29, %30, %cst_19 {dimension_numbers = #tpu.dot_dimension_numbers<[2], [1], [1], [2], [0, 0, 0, 1, 1, 2], [0], [0]>} : vector<4x8x8xbf16>, vector<4x8x8xbf16>, vector<4x8x8xf32> -> vector<4x8x8xf32>
    "tpu.trace_stop"() : () -> ()
    %32 = arith.truncf %31 : vector<4x8x8xf32> to vector<4x8x8xbf16>
    %c0_20 = arith.constant 0 : index
    %c0_21 = arith.constant 0 : index
    %c0_22 = arith.constant 0 : index
    %33 = vector.load %arg11[%c0_20, %c0_21, %c0_22] : memref<4x8x32xbf16, #tpu.memory_space<vmem>>, vector<4x8x32xbf16>
    "tpu.trace_start"() <{level = 10 : i32, message = "htk,hkm->htm"}> : () -> ()
    %cst_23 = arith.constant dense<0.000000e+00> : vector<4x8x32xf32>
    %34 = tpu.matmul %32, %33, %cst_23 {dimension_numbers = #tpu.dot_dimension_numbers<[2], [1], [1], [2], [0, 0, 0, 1, 1, 2], [0], [0]>} : vector<4x8x8xbf16>, vector<4x8x32xbf16>, vector<4x8x32xf32> -> vector<4x8x32xf32>
    "tpu.trace_stop"() : () -> ()
    %cst_24 = arith.constant dense<0.000000e+00> : vector<8x32xf32>
    %35 = vector.multi_reduction <add>, %34, %cst_24 [0] : vector<4x8x32xf32> to vector<8x32xf32>
    %c0_25 = arith.constant 0 : index
    %c0_26 = arith.constant 0 : index
    %36 = vector.load %arg12[%c0_25, %c0_26] : memref<1x32xf32, #tpu.memory_space<vmem>>, vector<1x32xf32>
    %37 = vector.broadcast %36 : vector<1x32xf32> to vector<8x32xf32>
    %38 = arith.addf %35, %37 : vector<8x32xf32>
    %c0_27 = arith.constant 0 : index
    %c0_28 = arith.constant 0 : index
    %c0_29 = arith.constant 0 : index
    %39 = vector.load %arg13[%c0_27, %c0_28, %c0_29] : memref<1x8x32xf32, #tpu.memory_space<vmem>>, vector<1x8x32xf32>
    %40 = vector.shape_cast %39 : vector<1x8x32xf32> to vector<8x32xf32>
    %41 = vector.shape_cast %38 : vector<8x32xf32> to vector<1x8x32xf32>
    tpu.vector_store %arg13[%c0_27, %c0_28, %c0_29], %41 {strides = array<i32>} : memref<1x8x32xf32, #tpu.memory_space<vmem>>, vector<1x8x32xf32>,
    return
  }
  func.func @transform_0(%arg0: i32, %arg1: i32) -> (i32, i32, i32) {
    %c0_i32 = arith.constant 0 : i32
    %c0_i32_0 = arith.constant 0 : i32
    return %arg0, %arg1, %c0_i32 : i32, i32, i32
  }
  func.func @transform_1(%arg0: i32, %arg1: i32) -> (i32, i32, i32) {
    %c0_i32 = arith.constant 0 : i32
    %c0_i32_0 = arith.constant 0 : i32
    %c0_i32_1 = arith.constant 0 : i32
    return %arg0, %c0_i32, %c0_i32_0 : i32, i32, i32
  }
  func.func @transform_2(%arg0: i32, %arg1: i32) -> (i32, i32, i32) {
    %c0_i32 = arith.constant 0 : i32
    %c0_i32_0 = arith.constant 0 : i32
    %c0_i32_1 = arith.constant 0 : i32
    return %arg0, %c0_i32, %c0_i32_0 : i32, i32, i32
  }
  func.func @transform_3(%arg0: i32, %arg1: i32) -> (i32, i32, i32) {
    %c0_i32 = arith.constant 0 : i32
    %c0_i32_0 = arith.constant 0 : i32
    %c0_i32_1 = arith.constant 0 : i32
    %c0_i32_2 = arith.constant 0 : i32
    return %c0_i32, %c0_i32_0, %c0_i32_1 : i32, i32, i32
  }
  func.func @transform_4(%arg0: i32, %arg1: i32) -> (i32, i32, i32) {
    %c0_i32 = arith.constant 0 : i32
    %c0_i32_0 = arith.constant 0 : i32
    %c0_i32_1 = arith.constant 0 : i32
    %c0_i32_2 = arith.constant 0 : i32
    return %c0_i32, %c0_i32_0, %c0_i32_1 : i32, i32, i32
  }
  func.func @transform_5(%arg0: i32, %arg1: i32) -> (i32, i32, i32) {
    %c0_i32 = arith.constant 0 : i32
    %c0_i32_0 = arith.constant 0 : i32
    %c0_i32_1 = arith.constant 0 : i32
    %c0_i32_2 = arith.constant 0 : i32
    return %c0_i32, %c0_i32_0, %c0_i32_1 : i32, i32, i32
  }
  func.func @transform_6(%arg0: i32, %arg1: i32) -> (i32, i32, i32) {
    %c0_i32 = arith.constant 0 : i32
    %c0_i32_0 = arith.constant 0 : i32
    %c0_i32_1 = arith.constant 0 : i32
    %c0_i32_2 = arith.constant 0 : i32
    return %c0_i32, %c0_i32_0, %c0_i32_1 : i32, i32, i32
  }
  func.func @transform_7(%arg0: i32, %arg1: i32) -> (i32, i32, i32) {
    %c0_i32 = arith.constant 0 : i32
    %c0_i32_0 = arith.constant 0 : i32
    %c0_i32_1 = arith.constant 0 : i32
    %c0_i32_2 = arith.constant 0 : i32
    return %c0_i32, %c0_i32_0, %c0_i32_1 : i32, i32, i32
  }
  func.func @transform_8(%arg0: i32, %arg1: i32) -> (i32, i32, i32) {
    %c0_i32 = arith.constant 0 : i32
    %c0_i32_0 = arith.constant 0 : i32
    %c0_i32_1 = arith.constant 0 : i32
    %c0_i32_2 = arith.constant 0 : i32
    return %c0_i32, %c0_i32_0, %c0_i32_1 : i32, i32, i32
  }
  func.func @transform_9(%arg0: i32, %arg1: i32) -> (i32, i32, i32) {
    %c0_i32 = arith.constant 0 : i32
    %c0_i32_0 = arith.constant 0 : i32
    %c0_i32_1 = arith.constant 0 : i32
    %c0_i32_2 = arith.constant 0 : i32
    return %c0_i32, %c0_i32_0, %c0_i32_1 : i32, i32, i32
  }
  func.func @transform_10(%arg0: i32, %arg1: i32) -> (i32, i32) {
    %c0_i32 = arith.constant 0 : i32
    %c0_i32_0 = arith.constant 0 : i32
    %c0_i32_1 = arith.constant 0 : i32
    return %c0_i32, %c0_i32_0 : i32, i32
  }
  func.func @transform_11(%arg0: i32, %arg1: i32) -> (i32, i32, i32) {
    %c0_i32 = arith.constant 0 : i32
    %c0_i32_0 = arith.constant 0 : i32
    return %arg0, %arg1, %c0_i32 : i32, i32, i32
  }
}

</mosaic_0001>

<bundles_post_ra>
// kernel: tpu_custom_call.1
= control target key start
LH: loop header
LB: loop body
LE: loop exit
PB: predicated region body
PF: predicated region fallthrough
CT: control target
= control target key end

     0   :  { %s2908_s0 = inlined_call_operand.vmem [shape: f32[2,8,32], index: 0, kind: input, shape index: {}]   ;;  %s2909_s1 = inlined_call_operand.vmem [shape: f32[2,8,32], index: 1, kind: input, shape index: {}]   ;;  %s2910_s2 = inlined_call_operand.vmem [shape: f32[2,8,32], index: 2, kind: input, shape index: {}]   ;;  %s2911_s3 = inlined_call_operand.vmem [shape: bf16[4,32,8], index: 3, kind: input, shape index: {}]   ;;  %s2912_s4 = inlined_call_operand.vmem [shape: f32[4,1,8], index: 4, kind: input, shape index: {}]   ;;  %s2913_s5 = inlined_call_operand.vmem [shape: bf16[4,32,8], index: 5, kind: input, shape index: {}]   ;;  %s2914_s6 = inlined_call_operand.vmem [shape: f32[4,1,8], index: 6, kind: input, shape index: {}]   ;;  %s2915_s7 = inlined_call_operand.vmem [shape: bf16[4,32,8], index: 7, kind: input, shape index: {}]   ;;  %s2916_s8 = inlined_call_operand.vmem [shape: f32[4,1,8], index: 8, kind: input, shape index: {}]   ;;  %s2917_s9 = inlined_call_operand.vmem [shape: bf16[4,8,32], index: 9, kind: input, shape index: {}]   ;;  %s2918_s10 = inlined_call_operand.vmem [shape: f32[1,32], index: 10, kind: input, shape index: {}]   ;;  %s2919_s11 = inlined_call_operand.hbm [shape: f32[2,8,32], index: 11, kind: output, shape index: {}]  }
   0x1   :  { %2920 = sst [smem:[#allocation7_spill]] %s2908_s0 }
   0x2   :  { %2921 = sst [smem:[#allocation8_spill]] %s2909_s1 }
   0x3   :  { %16 = vsyncpa [#allocation5], 0 }
   0x4   :  { %18 = vsyncpa [#allocation5 + $0x1], 0  ;;  %s2528_s17 = smov 0   ;;  %s2530_s18 = smov 0  }
   0x5   :  { %s2532_s19 = smov 0   ;;  %s2534_s20 = smov 0  }
   0x6   :  { %s2536_s21 = smov 0   ;;  %s2538_s22 = smov 0  }
   0x7 LB: > { %s1988_s23 = sadd.s32 4294967295, %s2463_s22   ;;  %s1989_s24 = sadd.s32 4294967294, %s2463_s22   ;;  %s2463_s22 = sphi %s2538_s22, %s24_s22   ;;  %s2459_s21 = sphi %s2536_s21, %s2930_s21   ;;  %s2455_s20 = sphi %s2534_s20, %s2929_s20   ;;  %s2451_s19 = sphi %s2532_s19, %s2928_s19   ;;  %s2447_s18 = sphi %s2530_s18, %s2927_s18   ;;  %s2443_s17 = sphi %s2528_s17, %s2926_s17  }
   0x8   : > { %s36_s25 = sadd.s32 1, %s2459_s21  ;;  %s293_s26 = sadd.s32 1, %s2451_s19 }
   0x9   : > { %p38_p0 = scmp.ge.s32.totalorder %s36_s25, 2  ;;  %p303_p1 = scmp.ne.s32.totalorder %s2451_s19, %s2447_s18 }
   0xa   : > { %p304_p2 = scmp.eq.s32.totalorder %s1988_s23, 1  ;;  %p309_p3 = scmp.ne.s32.totalorder %s2447_s18, %s2443_s17 }
   0xb   : > { %s2932_s25 = smov (%p38_p0, %s36_s25), 0  ;;  %p310_p5 = scmp.eq.s32.totalorder %s1989_s24, 1 }
   0xc   : > { %p2568_p4 = por %p304_p2, %p303_p1  ;;  %s288_s28 = ssub.s32 %s2459_s21, %s2932_s25 }
   0xd   : > { %p1992_p6 = scmp.ge.s32.totalorder %s2463_s22, 1  ;;  %p291_p7 = scmp.eq.s32.totalorder %s288_s28, 0 }
   0xe   : > { %p2575_p8 = por %p310_p5, %p309_p3  ;;  %p376_p9 = scmp.lt.s32.totalorder %s2463_s22, 3 }
   0xf   : > { %s2581_s30 = scalar_select %p291_p7, %s2451_s19, %s293_s26  }
  0x10   : > { %p377_p10 = pnand %p1992_p6, %p376_p9 }
  0x11   : > { %p426_p11 = scmp.lt.s32.totalorder (!%p377_p10), %s2455_s20, 1  ;;  %s2924_s1 = sld [smem:[#allocation8_spill]] (!%p377_p10) }
  0x12   : > { %380 = sbr.rel (%p377_p10) target bundleno = 1188 (0x4a4), region = 64  ;;  %s2925_s0 = sld [smem:[#allocation7_spill]] (!%p377_p10) }
  0x13   : > { %s2059_s13 = sshll.u32 (!%p377_p10), %s2455_s20, 7 }
  0x17   : > { %v2347_v0 = vld [vmem:[%s2913_s5 + $0x8] sm:$0xff]   ;;  %v2465_v1 = vmov 0.0   ;;  %v2348_v2 = vld [vmem:[%s2913_s5 + $0x18] sm:$0xff]   ;;  %v2349_v3 = vld [vmem:[%s2913_s5] sm:$0xff]   ;;  %vm2466_vm0 = vmmov 0   ;;  %s427_s28 = scalar_select %p426_p11, %s2455_s20, 1 }
  0x18   : > { %2122 = vmatprep.subr.bf16.mxu0 %v2465_v1  ;;  %2130 = vmatprep.subr.bf16.mxu1 %v2465_v1  ;;  %v2350_v4 = vld [vmem:[%s2913_s5 + $0x10] sm:$0xff]   ;;  %v2351_v5 = vld [vmem:[%s2913_s5 + $0x28] sm:$0xff]   ;;  %v2352_v6 = vld [vmem:[%s2913_s5 + $0x38] sm:$0xff]   ;;  %vm504_vm1 = vcmask 261120   ;;  %vm965_vm2 = vcmask 60416   ;;  %vm1248_vm3 = vcmask 64512  }
  0x19   : > { %2123 = vmatpush3.bf16.msra.mxu0 %v2347_v0  ;;  %2126 = vmatprep.mubr.msk.bf16.mxu0 %vm2466_vm0, %v2465_v1  ;;  %s2605_s12 = sshll.u32 %s427_s28, 3  ;;  %v2353_v9 = vld [vmem:[%s2913_s5 + $0x20] sm:$0xff]   ;;  %v2354_v10 = vld [vmem:[%s2913_s5 + $0x30] sm:$0xff]   ;;  %v2355_v11 = vld [vmem:[%s2915_s7 + $0x8] sm:$0xff]   ;;  %vm1488_vm4 = vcmask 1043456   ;;  %s2467_s20 = smov [#allocation4]  }
  0x1a   : > { %2131 = vmatpush3.bf16.msra.mxu1 %v2348_v2  ;;  %2124 = vmatprep.subr.bf16.mxu0 %v2465_v1  ;;  %s436_s23 = scalar_lea.vmem %s2924_s1, %s2605_s12  ;;  %v2356_v12 = vld [vmem:[%s2915_s7 + $0x18] sm:$0xff]   ;;  %s440_s14 = scalar_lea.vmem %s2910_s2, %s2605_s12  ;;  %v2357_v13 = vld [vmem:[%s2915_s7] sm:$0xff]   ;;  %v2358_v14 = vld [vmem:[%s2915_s7 + $0x10] sm:$0xff]  }
  0x1b   : > { %2132 = vmatprep.subr.bf16.mxu1 %v2465_v1  ;;  %2134 = vmatprep.mubr.msk.bf16.mxu1 %vm2466_vm0, %v2465_v1  ;;  %v446_v7 = vld [vmem:[%s436_s23] sm:$0xff]  ;;  %v2359_v17 = vld [vmem:[%s2915_s7 + $0x28] sm:$0xff]   ;;  %v2360_v18 = vld [vmem:[%s2915_s7 + $0x38] sm:$0xff]   ;;  %s432_s23 = scalar_lea.vmem %s2925_s0, %s2605_s12  ;;  %s2867_s0 = scalar_lea.hbm %s2919_s11, %s2059_s13 }
  0x1c   : > { %v447_v8 = vpack.c.bf16 %v446_v7, %v446_v7  ;;  %v704_v15 = vld [vmem:[%s440_s14] sm:$0xff]  ;;  %v2362_v20 = vld [vmem:[%s2915_s7 + $0x30] sm:$0xff]   ;;  %v2363_v21 = vld [vmem:[%s2911_s3 + $0x8] sm:$0xff]  }
  0x1d   : > { %2125 = vmatpush3.bf16.msra.mxu0 %v2349_v3  ;;  %v705_v16 = vpack.c.bf16 %v704_v15, %v704_v15  ;;  %v2361_v19 = vld [vmem:[%s2915_s7 + $0x20] sm:$0xff]   ;;  %v2364_v22 = vld [vmem:[%s2911_s3 + $0x18] sm:$0xff]   ;;  %v2366_v24 = vld [vmem:[%s2911_s3 + $0x10] sm:$0xff]  }
  0x1e   : > { %2133 = vmatpush3.bf16.msra.mxu1 %v2350_v4  ;;  %2138 = vmatprep.subr.bf16.mxu0 %v2465_v1  ;;  %v2365_v23 = vld [vmem:[%s2911_s3] sm:$0xff]   ;;  %v2367_v27 = vld [vmem:[%s2911_s3 + $0x28] sm:$0xff]   ;;  %v2368_v28 = vld [vmem:[%s2911_s3 + $0x38] sm:$0xff]  }
  0x1f   : > { %2146 = vmatprep.subr.bf16.mxu1 %v2465_v1  ;;  %v978_v25 = vld [vmem:[%s432_s23] sm:$0xff]  ;;  %v2370_v30 = vld [vmem:[%s2911_s3 + $0x30] sm:$0xff]   ;;  %s423_s23 = sand.u32 1, %s2447_s18  }
  0x20   : > { %2127 = vmatmul.mubr.msk.bf16.vlgmr.msra.gmra.mxu0 %vm504_vm1, %v447_v8  ;;  %v979_v26 = vpack.c.bf16 %v978_v25, %v978_v25  ;;  %v2369_v29 = vld [vmem:[%s2911_s3 + $0x20] sm:$0xff]   ;;  %s1993_s24 = sshll.u32 %s423_s23, 3  ;;  %s1879_s26 = scalar_lea.sflag [#allocation5], %s423_s23 }
  0x21   : > { %2135 = vmatmul.mubr.msk.bf16.vlgmr.msra.gmra.mxu1 %vm504_vm1, %v447_v8  ;;  %2139 = vmatpush3.bf16.msra.mxu0 %v2351_v5  ;;  %v1997_v31 = vld [vmem:[%s2914_s6] ss:$0 sm:$0xff]  ;;  %v1998_v32 = vld [vmem:[%s2914_s6 + $0x1] ss:$0 sm:$0xff]  ;;  %v1999_v45 = vld [vmem:[%s2914_s6 + $0x2] ss:$0 sm:$0xff] }
  0x22   : > { %2147 = vmatpush3.bf16.msra.mxu1 %v2352_v6  ;;  %2140 = vmatprep.subr.bf16.mxu0 %v2465_v1  ;;  %v2000_v46 = vld [vmem:[%s2914_s6 + $0x3] ss:$0 sm:$0xff]  ;;  %v2013_v63 = vld [vmem:[%s2916_s8] ss:$0 sm:$0xff]  ;;  %v2014_v0 = vld [vmem:[%s2916_s8 + $0x1] ss:$0 sm:$0xff] }
  0x23   : > { %2148 = vmatprep.subr.bf16.mxu1 %v2465_v1  ;;  %2142 = vmatprep.mubr.msk.bf16.mxu0 %vm2466_vm0, %v2465_v1  ;;  %v2016_v15 = vld [vmem:[%s2916_s8 + $0x3] ss:$0 sm:$0xff]  ;;  %s425_s12 = scalar_lea.vmem [#allocation4], %s1993_s24  ;;  %s2391_s24 = sshll.u32 %s2467_s20, 4  ;;  %s2392_s24 = int_to_ptr.vmem [resolvable:$false] %s2391_s24 }
  0x24   : > { %2150 = vmatprep.mubr.msk.bf16.mxu1 %vm2466_vm0, %v2465_v1  ;;  %s1893_s15 = sshll.u32 %s425_s12, 4  ;;  %s2393_s1 = scalar_lea.vmem %s2392_s24, 256  ;;  %s1894_s15 = int_to_ptr.vmem [resolvable:$true] %s1893_s15 }
  0x25   : > { %2141 = vmatpush3.bf16.msra.mxu0 %v2353_v9  ;;  %s2387_s28 = scalar_lea.vmem %s1894_s15, 128  ;;  %p2394_p1 = scmp.lt.s32.totalorder %s1894_s15, %s2392_s24 }
  0x26   : > { %2149 = vmatpush3.bf16.msra.mxu1 %v2354_v10  ;;  %2154 = vmatprep.subr.bf16.mxu0 %v2465_v1  ;;  %p2388_p12 = scmp.ne.s32.totalorder %s1894_s15, %s2387_s28  ;;  %p2395_p2 = scmp.lt.s32.totalorder %s2393_s1, %s2387_s28 }
  0x27   : > { %2162 = vmatprep.subr.bf16.mxu1 %v2465_v1 }
  0x28   : > { %2143 = vmatmul.mubr.msk.bf16.vlgmr.msra.gmra.mxu0 %vm504_vm1, %v447_v8  ;;  %p2389_p13 = pnand %p2388_p12, %p2568_p4  ;;  %p2396_p3 = por %p2395_p2, %p2394_p1 }
  0x29   : > { %2151 = vmatmul.mubr.msk.bf16.vlgmr.msra.gmra.mxu1 %vm504_vm1, %v447_v8  ;;  %2155 = vmatpush3.bf16.msra.mxu0 %v2355_v11 }
  0x2a   : > { %2163 = vmatpush3.bf16.msra.mxu1 %v2356_v12  ;;  %2156 = vmatprep.subr.bf16.mxu0 %v2465_v1  ;;  %p2390_p0 = pneg %p2389_p13 }
  0x2b   : > { %2164 = vmatprep.subr.bf16.mxu1 %v2465_v1  ;;  %2158 = vmatprep.mubr.msk.bf16.mxu0 %vm2466_vm0, %v2465_v1 }
  0x2c   : > { %2166 = vmatprep.mubr.msk.bf16.mxu1 %vm2466_vm0, %v2465_v1  ;;  %p2397_p5 = pnand %p2396_p3, %p2390_p0 }
  0x2d   : > { %2157 = vmatpush3.bf16.msra.mxu0 %v2357_v13 }
  0x2e   : > { %2165 = vmatpush3.bf16.msra.mxu1 %v2358_v14  ;;  %2170 = vmatprep.subr.bf16.mxu0 %v2465_v1  ;;  %v2015_v14 = vld [vmem:[%s2916_s8 + $0x2] ss:$0 sm:$0xff] }
  0x2f   : > { %2178 = vmatprep.subr.bf16.mxu1 %v2465_v1 }
  0x30   : > { %2159 = vmatmul.mubr.msk.bf16.vlgmr.msra.gmra.mxu0 %vm504_vm1, %v705_v16 }
  0x31   : > { %2167 = vmatmul.mubr.msk.bf16.vlgmr.msra.gmra.mxu1 %vm504_vm1, %v705_v16  ;;  %2171 = vmatpush3.bf16.msra.mxu0 %v2359_v17 }
  0x32   : > { %2179 = vmatpush3.bf16.msra.mxu1 %v2360_v18  ;;  %2172 = vmatprep.subr.bf16.mxu0 %v2465_v1 }
  0x33   : > { %2180 = vmatprep.subr.bf16.mxu1 %v2465_v1  ;;  %2174 = vmatprep.mubr.msk.bf16.mxu0 %vm2466_vm0, %v2465_v1 }
  0x34   : > { %2182 = vmatprep.mubr.msk.bf16.mxu1 %vm2466_vm0, %v2465_v1 }
  0x35   : > { %2173 = vmatpush3.bf16.msra.mxu0 %v2361_v19 }
  0x36   : > { %2181 = vmatpush3.bf16.msra.mxu1 %v2362_v20  ;;  %2186 = vmatprep.subr.bf16.mxu0 %v2465_v1 }
  0x37   : > { %2194 = vmatprep.subr.bf16.mxu1 %v2465_v1 }
  0x38   : > { %2175 = vmatmul.mubr.msk.bf16.vlgmr.msra.gmra.mxu0 %vm504_vm1, %v705_v16 }
  0x39   : > { %2183 = vmatmul.mubr.msk.bf16.vlgmr.msra.gmra.mxu1 %vm504_vm1, %v705_v16  ;;  %2187 = vmatpush3.bf16.msra.mxu0 %v2363_v21 }
  0x3a   : > { %2195 = vmatpush3.bf16.msra.mxu1 %v2364_v22  ;;  %2188 = vmatprep.subr.bf16.mxu0 %v2465_v1 }
  0x3b   : > { %2196 = vmatprep.subr.bf16.mxu1 %v2465_v1  ;;  %2190 = vmatprep.mubr.msk.bf16.mxu0 %vm2466_vm0, %v2465_v1 }
  0x3c   : > { %2198 = vmatprep.mubr.msk.bf16.mxu1 %vm2466_vm0, %v2465_v1 }
  0x3d   : > { %2189 = vmatpush3.bf16.msra.mxu0 %v2365_v23 }
  0x3e   : > { %2197 = vmatpush3.bf16.msra.mxu1 %v2366_v24  ;;  %2202 = vmatprep.subr.bf16.mxu0 %v2465_v1 }
  0x3f   : > { %2210 = vmatprep.subr.bf16.mxu1 %v2465_v1 }
  0x40   : > { %2191 = vmatmul.mubr.msk.bf16.vlgmr.msra.gmra.mxu0 %vm504_vm1, %v979_v26 }
  0x41   : > { %2199 = vmatmul.mubr.msk.bf16.vlgmr.msra.gmra.mxu1 %vm504_vm1, %v979_v26  ;;  %2203 = vmatpush3.bf16.msra.mxu0 %v2367_v27 }
  0x42   : > { %2211 = vmatpush3.bf16.msra.mxu1 %v2368_v28  ;;  %2204 = vmatprep.subr.bf16.mxu0 %v2465_v1  ;;  %v2029_v28 = vld [vmem:[%s2912_s4] ss:$0 sm:$0xff] }
  0x43   : > { %2212 = vmatprep.subr.bf16.mxu1 %v2465_v1  ;;  %2206 = vmatprep.mubr.msk.bf16.mxu0 %vm2466_vm0, %v2465_v1 }
  0x44   : > { %2214 = vmatprep.mubr.msk.bf16.mxu1 %vm2466_vm0, %v2465_v1 }
  0x45   : > { %2205 = vmatpush3.bf16.msra.mxu0 %v2369_v29  ;;  %v2030_v29 = vld [vmem:[%s2912_s4 + $0x1] ss:$0 sm:$0xff] }
  0x46   : > { %2213 = vmatpush3.bf16.msra.mxu1 %v2370_v30  ;;  %2218 = vmatprep.subr.bf16.mxu0 %v2465_v1 }
  0x47   : > { %2224 = vmatprep.subr.bf16.mxu1 %v2465_v1 }
  0x48   : > { %2207 = vmatmul.mubr.msk.bf16.vlgmr.msra.gmra.mxu0 %vm504_vm1, %v979_v26 }
  0x49   : > { %2215 = vmatmul.mubr.msk.bf16.vlgmr.msra.gmra.mxu1 %vm504_vm1, %v979_v26  ;;  %2220 = vmatprep.mubr.msk.bf16.mxu0 %vm2466_vm0, %v2465_v1 }
  0x4a   : > { %2226 = vmatprep.mubr.msk.bf16.mxu1 %vm2466_vm0, %v2465_v1 }
  0xe0   : > { %v542_v33 = vpop.f32.mrf.mxu0 }
  0xe1   : > { %v594_v34 = vpop.f32.mrf.mxu1  ;;  %v543_v35 = vadd.f32 %v1997_v31, %v542_v33 }
  0xe2   : > { %v595_v36 = vadd.f32 %v1998_v32, %v594_v34  ;;  %v2128_v37 = vpop.f32.mrf.mxu0 }
  0xe3   : > { %v2136_v38 = vpop.f32.mrf.mxu1  ;;  %v961_v39 = vpack.c.bf16 %v543_v35, %v543_v35 }
  0xe4   : > { %v962_v40 = vpack.c.bf16 %v595_v36, %v595_v36  ;;  %v545_v41 = vpop.f32.mrf.mxu0 }
  0xe5   : > { %v597_v42 = vpop.f32.mrf.mxu1  ;;  %966 = vst.msk [vmem:[#allocation2] sm:$0xf] %vm965_vm2, %v961_v39 }
  0xe6   : > { %967 = vst.msk [vmem:[#allocation2 + $0x4] sm:$0xf] %vm965_vm2, %v962_v40  ;;  %v2129_v43 = vpop.f32.mrf.mxu0 }
  0xe7   : > { %v2137_v44 = vpop.f32.mrf.mxu1 }
  0xe8   : > { %v646_v47 = vpop.f32.mrf.mxu0 }
  0xe9   : > { %v698_v48 = vpop.f32.mrf.mxu1  ;;  %v647_v49 = vadd.f32 %v1999_v45, %v646_v47  ;;  %v2032_v47 = vld [vmem:[%s2912_s4 + $0x3] ss:$0 sm:$0xff] }
  0xea   : > { %v699_v50 = vadd.f32 %v2000_v46, %v698_v48  ;;  %v2144_v51 = vpop.f32.mrf.mxu0  ;;  %v2031_v46 = vld [vmem:[%s2912_s4 + $0x2] ss:$0 sm:$0xff] }
  0xeb   : > { %v2152_v52 = vpop.f32.mrf.mxu1  ;;  %v963_v53 = vpack.c.bf16 %v647_v49, %v647_v49 }
  0xec   : > { %v964_v54 = vpack.c.bf16 %v699_v50, %v699_v50  ;;  %v649_v55 = vpop.f32.mrf.mxu0  ;;  %v1244_v57 = vld [vmem:[#allocation2] sm:$0xf] }
  0xed   : > { %v701_v56 = vpop.f32.mrf.mxu1  ;;  %v1245_v58 = vld [vmem:[#allocation2 + $0x4] sm:$0xf]  ;;  %968 = vst.msk [vmem:[#allocation2 + $0x8] sm:$0xf] %vm965_vm2, %v963_v53  ;;  %v1253_v59 = vsel %vm1248_vm3, %v1244_v57, 0 }
  0xee   : > { %969 = vst.msk [vmem:[#allocation2 + $0xc] sm:$0xf] %vm965_vm2, %v964_v54  ;;  %v1299_v60 = vsel %vm1248_vm3, %v1245_v58, 0  ;;  %v2145_v61 = vpop.f32.mrf.mxu0  ;;  %2219 = vmatpush3.bf16.xpose.msra.mxu0 %v1253_v59 }
  0xef   : > { %v2153_v62 = vpop.f32.mrf.mxu1  ;;  %2225 = vmatpush3.bf16.xpose.msra.mxu1 %v1299_v60  ;;  %2230 = vmatprep.subr.bf16.mxu0 %v2465_v1 }
  0xf0   : > { %2236 = vmatprep.subr.bf16.mxu1 %v2465_v1  ;;  %v799_v2 = vpop.f32.mrf.mxu0 }
  0xf1   : > { %v851_v3 = vpop.f32.mrf.mxu1  ;;  %v800_v4 = vadd.f32 %v2013_v63, %v799_v2 }
  0xf2   : > { %v852_v5 = vadd.f32 %v2014_v0, %v851_v3  ;;  %v2160_v6 = vpop.f32.mrf.mxu0 }
  0xf3   : > { %v2168_v7 = vpop.f32.mrf.mxu1  ;;  %v970_v8 = vpack.c.bf16 %v800_v4, %v800_v4 }
  0xf4   : > { %v971_v9 = vpack.c.bf16 %v852_v5, %v852_v5  ;;  %v802_v10 = vpop.f32.mrf.mxu0  ;;  %v1246_v40 = vld [vmem:[#allocation2 + $0x8] sm:$0xf] }
  0xf5   : > { %v854_v11 = vpop.f32.mrf.mxu1  ;;  %974 = vst.msk [vmem:[#allocation3] sm:$0xf] %vm965_vm2, %v970_v8  ;;  %v1247_v41 = vld [vmem:[#allocation2 + $0xc] sm:$0xf]  ;;  %v1345_v48 = vsel %vm1248_vm3, %v1246_v40, 0 }
  0xf6   : > { %975 = vst.msk [vmem:[#allocation3 + $0x4] sm:$0xf] %vm965_vm2, %v971_v9  ;;  %v2161_v12 = vpop.f32.mrf.mxu0  ;;  %v1391_v49 = vsel %vm1248_vm3, %v1247_v41, 0 }
  0xf7   : > { %v2169_v13 = vpop.f32.mrf.mxu1 }
  0xf8   : > { %v903_v16 = vpop.f32.mrf.mxu0 }
  0xf9   : > { %v955_v17 = vpop.f32.mrf.mxu1  ;;  %v904_v18 = vadd.f32 %v2015_v14, %v903_v16 }
  0xfa   : > { %v956_v19 = vadd.f32 %v2016_v15, %v955_v17  ;;  %v2176_v20 = vpop.f32.mrf.mxu0 }
  0xfb   : > { %v2184_v21 = vpop.f32.mrf.mxu1  ;;  %v972_v22 = vpack.c.bf16 %v904_v18, %v904_v18 }
  0xfc   : > { %v973_v23 = vpack.c.bf16 %v956_v19, %v956_v19  ;;  %v906_v24 = vpop.f32.mrf.mxu0  ;;  %v1481_v60 = vld [vmem:[#allocation3] sm:$0xf] }
  0xfd   : > { %v958_v25 = vpop.f32.mrf.mxu1  ;;  %976 = vst.msk [vmem:[#allocation3 + $0x8] sm:$0xf] %vm965_vm2, %v972_v22  ;;  %v1482_v61 = vld [vmem:[#allocation3 + $0x4] sm:$0xf]  ;;  %v1490_v3 = vsel %vm1488_vm4, %v1481_v60, 0 }
  0xfe   : > { %977 = vst.msk [vmem:[#allocation3 + $0xc] sm:$0xf] %vm965_vm2, %v973_v23  ;;  %v2177_v26 = vpop.f32.mrf.mxu0  ;;  %v1536_v4 = vsel %vm1488_vm4, %v1482_v61, 0 }
  0xff   : > { %v2185_v27 = vpop.f32.mrf.mxu1 }
 0x100   : > { %v1074_v30 = vpop.f32.mrf.mxu0 }
 0x101   : > { %v1126_v31 = vpop.f32.mrf.mxu1  ;;  %v1075_v32 = vadd.f32 %v2029_v28, %v1074_v30 }
 0x102   : > { %v1127_v33 = vadd.f32 %v2030_v29, %v1126_v31  ;;  %v2192_v34 = vpop.f32.mrf.mxu0 }
 0x103   : > { %v2200_v35 = vpop.f32.mrf.mxu1  ;;  %v1236_v36 = vmul.f32 0.35355338, %v1075_v32 }
 0x104   : > { %v1237_v37 = vmul.f32 0.35355338, %v1127_v33  ;;  %v1077_v38 = vpop.f32.mrf.mxu0 }
 0x105   : > { %v1129_v39 = vpop.f32.mrf.mxu1  ;;  %v1240_v42 = vpack.c.bf16 %v1236_v36, %v1236_v36 }
 0x106   : > { %v1241_v43 = vpack.c.bf16 %v1237_v37, %v1237_v37  ;;  %v2193_v44 = vpop.f32.mrf.mxu0 }
 0x107   : > { %v2201_v45 = vpop.f32.mrf.mxu1  ;;  %2221 = vmatmul.mubr.msk.bf16.vlgmr.msra.gmra.mxu0 %vm1248_vm3, %v1240_v42 }
 0x108   : > { %2227 = vmatmul.mubr.msk.bf16.vlgmr.msra.gmra.mxu1 %vm1248_vm3, %v1241_v43  ;;  %2231 = vmatpush3.bf16.xpose.msra.mxu0 %v1345_v48  ;;  %v1178_v50 = vpop.f32.mrf.mxu0 }
 0x109   : > { %2237 = vmatpush3.bf16.xpose.msra.mxu1 %v1391_v49  ;;  %v1230_v51 = vpop.f32.mrf.mxu1  ;;  %v1179_v52 = vadd.f32 %v2031_v46, %v1178_v50  ;;  %2232 = vmatprep.mubr.msk.bf16.mxu0 %vm2466_vm0, %v2465_v1 }
 0x10a   : > { %v1231_v53 = vadd.f32 %v2032_v47, %v1230_v51  ;;  %2238 = vmatprep.mubr.msk.bf16.mxu1 %vm2466_vm0, %v2465_v1  ;;  %v2208_v54 = vpop.f32.mrf.mxu0  ;;  %2242 = vmatprep.subr.bf16.mxu0 %v2465_v1  ;;  %v1483_v51 = vld [vmem:[#allocation3 + $0x8] sm:$0xf] }
 0x10b   : > { %v2216_v55 = vpop.f32.mrf.mxu1  ;;  %2248 = vmatprep.subr.bf16.mxu1 %v2465_v1  ;;  %v1238_v56 = vmul.f32 0.35355338, %v1179_v52  ;;  %v1582_v54 = vsel %vm1488_vm4, %v1483_v51, 0 }
 0x10c   : > { %v1239_v57 = vmul.f32 0.35355338, %v1231_v53  ;;  %v1181_v58 = vpop.f32.mrf.mxu0 }
 0x10d   : > { %v1233_v59 = vpop.f32.mrf.mxu1  ;;  %v1242_v62 = vpack.c.bf16 %v1238_v56, %v1238_v56  ;;  %v1484_v56 = vld [vmem:[#allocation3 + $0xc] sm:$0xf] }
 0x10e   : > { %v1243_v63 = vpack.c.bf16 %v1239_v57, %v1239_v57  ;;  %v2209_v0 = vpop.f32.mrf.mxu0  ;;  %v1674_v59 = vld [vmem:[%s2917_s9] sm:$0xf]  ;;  %v1628_v60 = vsel %vm1488_vm4, %v1484_v56, 0 }
 0x10f   : > { %v2217_v2 = vpop.f32.mrf.mxu1  ;;  %2233 = vmatmul.mubr.msk.bf16.vlgmr.msra.gmra.mxu0 %vm1248_vm3, %v1242_v62 }
 0x110   : > { %2239 = vmatmul.mubr.msk.bf16.vlgmr.msra.gmra.mxu1 %vm1248_vm3, %v1243_v63  ;;  %2243 = vmatpush3.bf16.msra.mxu0 %v1490_v3  ;;  %v1682_v63 = vsel %vm1488_vm4, %v1674_v59, 0 }
 0x111   : > { %2249 = vmatpush3.bf16.msra.mxu1 %v1536_v4  ;;  %2244 = vmatprep.mubr.msk.bf16.mxu0 %vm2466_vm0, %v2465_v1  ;;  %v1675_v4 = vld [vmem:[%s2917_s9 + $0x4] sm:$0xf] }
 0x112   : > { %2254 = vmatprep.subr.bf16.mxu0 %v2465_v1  ;;  %2250 = vmatprep.mubr.msk.bf16.mxu1 %vm2466_vm0, %v2465_v1 }
 0x113   : > { %2260 = vmatprep.subr.bf16.mxu1 %v2465_v1 }
 0x1c7   : > { %v1289_v5 = vpop.f32.mrf.mxu0 }
 0x1c8   : > { %v1335_v6 = vpop.f32.mrf.mxu1  ;;  %v1433_v7 = vsel %vm1248_vm3, %v1289_v5, -inf }
 0x1c9   : > { %1434 = vmax.xlane.f32.xlu0 %v1433_v7  ;;  %v2222_v9 = vpop.f32.mrf.mxu0  ;;  %v1436_v10 = vsel %vm1248_vm3, %v1335_v6, -inf }
 0x1ca   : > { %v2228_v8 = vpop.f32.mrf.mxu1 }
 0x1cb   : > { %v1292_v11 = vpop.f32.mrf.mxu0 }
 0x1cc   : > { %v1338_v12 = vpop.f32.mrf.mxu1  ;;  %v1677_v11 = vld [vmem:[%s2917_s9 + $0xc] sm:$0xf] }
 0x1cd   : > { %1437 = vmax.xlane.f32.xlu0 %v1436_v10  ;;  %v2223_v14 = vpop.f32.mrf.mxu0 }
 0x1ce   : > { %v2229_v13 = vpop.f32.mrf.mxu1 }
 0x1cf   : > { %v1381_v15 = vpop.f32.mrf.mxu0 }
 0x1d0   : > { %v1427_v16 = vpop.f32.mrf.mxu1  ;;  %v1439_v17 = vsel %vm1248_vm3, %v1381_v15, -inf }
 0x1d1   : > { %1440 = vmax.xlane.f32.xlu1 %v1439_v17  ;;  %v2234_v19 = vpop.f32.mrf.mxu0  ;;  %v1442_v20 = vsel %vm1248_vm3, %v1427_v16, -inf }
 0x1d2   : > { %v2240_v18 = vpop.f32.mrf.mxu1 }
 0x1d3   : > { %v1384_v21 = vpop.f32.mrf.mxu0 }
 0x1d4   : > { %v1430_v22 = vpop.f32.mrf.mxu1 }
 0x1d5   : > { %1443 = vmax.xlane.f32.xlu1 %v1442_v20  ;;  %v2235_v24 = vpop.f32.mrf.mxu0 }
 0x1d6   : > { %v2241_v23 = vpop.f32.mrf.mxu1 }
 0x252   : > { %v1435_v25 = vpop.xlane.xlu0 %1434 }
 0x253   : > { %v1445_v26 = vsub.f32 %v1289_v5, %v1435_v25  ;;  %v1728_v5 = vsel %vm1488_vm4, %v1675_v4, 0 }
 0x255   : > { %v1449_v27 = vmul.f32 1.442695, %v1445_v26 }
 0x256   : > { %v1438_v28 = vpop.xlane.xlu0 %1437 }
 0x257   : > { %2371 = vpow2.f32 %v1449_v27  ;;  %v1446_v29 = vsub.f32 %v1335_v6, %v1438_v28  ;;  %v1676_v6 = vld [vmem:[%s2917_s9 + $0x8] sm:$0xf] }
 0x258   : > { %v1774_v9 = vsel %vm1488_vm4, %v1676_v6, 0 }
 0x259   : > { %v1451_v30 = vmul.f32 1.442695, %v1446_v29 }
 0x25a   : > { %v1441_v31 = vpop.xlane.xlu1 %1440 }
 0x25b   : > { %2373 = vpow2.f32 %v1451_v30  ;;  %v1447_v32 = vsub.f32 %v1381_v15, %v1441_v31  ;;  %v1820_v15 = vsel %vm1488_vm4, %v1677_v11, 0 }
 0x25d   : > { %v1453_v33 = vmul.f32 1.442695, %v1447_v32 }
 0x25e   : > { %v1444_v34 = vpop.xlane.xlu1 %1443 }
 0x25f   : > { %2375 = vpow2.f32 %v1453_v33  ;;  %v1448_v35 = vsub.f32 %v1427_v16, %v1444_v34 }
 0x261   : > { %v1455_v36 = vmul.f32 1.442695, %v1448_v35 }
 0x263   : > { %2377 = vpow2.f32 %v1455_v36 }
 0x264   : > { %v2372_v37 = vpop.eup %2371 }
 0x265   : > { %v1457_v38 = vsel %vm1248_vm3, %v2372_v37, 0.0 }
 0x266   : > { %1458 = vadd.xlane.f32.xlu0 %v1457_v38 }
 0x268   : > { %v2374_v39 = vpop.eup %2373 }
 0x269   : > { %v1460_v40 = vsel %vm1248_vm3, %v2374_v39, 0.0 }
 0x26a   : > { %1461 = vadd.xlane.f32.xlu1 %v1460_v40 }
 0x26c   : > { %v2376_v41 = vpop.eup %2375 }
 0x26d   : > { %v1463_v42 = vsel %vm1248_vm3, %v2376_v41, 0.0 }
 0x26e   : > { %1464 = vadd.xlane.f32.xlu0 %v1463_v42 }
 0x270   : > { %v2378_v43 = vpop.eup %2377 }
 0x271   : > { %v1466_v44 = vsel %vm1248_vm3, %v2378_v43, 0.0 }
 0x272   : > { %1467 = vadd.xlane.f32.xlu1 %v1466_v44 }
 0x2ef   : > { %v1459_v45 = vpop.xlane.xlu0 %1458 }
 0x2f0   : > { %2379 = vrcp.f32 %v1459_v45 }
 0x2f3   : > { %v1462_v46 = vpop.xlane.xlu1 %1461 }
 0x2f4   : > { %2381 = vrcp.f32 %v1462_v46 }
 0x2f7   : > { %v1465_v47 = vpop.xlane.xlu0 %1464 }
 0x2f8   : > { %2383 = vrcp.f32 %v1465_v47  ;;  %v2057_v47 = vld [vmem:[%s2918_s10] ss:$0 sm:$0xff] }
 0x2fb   : > { %v1468_v48 = vpop.xlane.xlu1 %1467 }
 0x2fc   : > { %2385 = vrcp.f32 %v1468_v48 }
 0x2fd   : > { %v2380_v49 = vpop.eup %2379 }
 0x2fe   : > { %v1473_v50 = vmul.f32 %v2380_v49, %v2372_v37 }
 0x300   : > { %v1477_v52 = vpack.c.bf16 %v1473_v50, %v1473_v50 }
 0x301   : > { %v2382_v53 = vpop.eup %2381 }
 0x302   : > { %2245 = vmatmul.mubr.msk.bf16.vlgmr.msra.gmra.mxu0 %vm1248_vm3, %v1477_v52  ;;  %v1474_v55 = vmul.f32 %v2382_v53, %v2374_v39 }
 0x303   : > { %2255 = vmatpush3.bf16.msra.mxu0 %v1582_v54  ;;  %2256 = vmatprep.mubr.msk.bf16.mxu0 %vm2466_vm0, %v2465_v1 }
 0x304   : > { %v1478_v57 = vpack.c.bf16 %v1474_v55, %v1474_v55  ;;  %2266 = vmatprep.subr.bf16.mxu0 %v2465_v1 }
 0x305   : > { %v2384_v58 = vpop.eup %2383 }
 0x306   : > { %2251 = vmatmul.mubr.msk.bf16.vlgmr.msra.gmra.mxu1 %vm1248_vm3, %v1478_v57  ;;  %v1475_v61 = vmul.f32 %v2384_v58, %v2376_v41 }
 0x307   : > { %2261 = vmatpush3.bf16.msra.mxu1 %v1628_v60  ;;  %2262 = vmatprep.mubr.msk.bf16.mxu1 %vm2466_vm0, %v2465_v1 }
 0x308   : > { %v1479_v62 = vpack.c.bf16 %v1475_v61, %v1475_v61  ;;  %2272 = vmatprep.subr.bf16.mxu1 %v2465_v1 }
 0x309   : > { %v2386_v0 = vpop.eup %2385 }
 0x30a   : > { %2257 = vmatmul.mubr.msk.bf16.vlgmr.msra.gmra.mxu0 %vm1248_vm3, %v1479_v62  ;;  %v1476_v2 = vmul.f32 %v2386_v0, %v2378_v43 }
 0x30b   : > { %2267 = vmatpush3.bf16.msra.mxu0 %v1682_v63  ;;  %2268 = vmatprep.mubr.msk.bf16.mxu0 %vm2466_vm0, %v2465_v1 }
 0x30c   : > { %v1480_v3 = vpack.c.bf16 %v1476_v2, %v1476_v2  ;;  %2278 = vmatprep.subr.bf16.mxu0 %v2465_v1 }
 0x30e   : > { %2263 = vmatmul.mubr.msk.bf16.vlgmr.msra.gmra.mxu1 %vm1248_vm3, %v1480_v3 }
 0x30f   : > { %2274 = vmatprep.mubr.msk.bf16.mxu1 %vm2466_vm0, %v2465_v1  ;;  %2273 = vmatpush3.bf16.msra.mxu1 %v1728_v5 }
 0x310   : > { %2284 = vmatprep.subr.bf16.mxu1 %v2465_v1 }
 0x3c2   : > { %v1526_v7 = vpop.f32.mrf.mxu0 }
 0x3c3   : > { %v1670_v8 = vpack.c.bf16 %v1526_v7, %v1526_v7 }
 0x3c4   : > { %v2246_v10 = vpop.f32.mrf.mxu0 }
 0x3c5   : > { %2269 = vmatmul.mubr.msk.bf16.vlgmr.msra.gmra.mxu0 %vm1248_vm3, %v1670_v8 }
 0x3c6   : > { %v1529_v12 = vpop.f32.mrf.mxu0  ;;  %v1572_v13 = vpop.f32.mrf.mxu1  ;;  %2279 = vmatpush3.bf16.msra.mxu0 %v1774_v9  ;;  %2280 = vmatprep.mubr.msk.bf16.mxu0 %vm2466_vm0, %v2465_v1 }
 0x3c7   : > { %v1671_v14 = vpack.c.bf16 %v1572_v13, %v1572_v13 }
 0x3c8   : > { %v2247_v16 = vpop.f32.mrf.mxu0  ;;  %v2252_v17 = vpop.f32.mrf.mxu1 }
 0x3c9   : > { %2275 = vmatmul.mubr.msk.bf16.vlgmr.msra.gmra.mxu1 %vm1248_vm3, %v1671_v14 }
 0x3ca   : > { %v1575_v18 = vpop.f32.mrf.mxu1  ;;  %v1618_v19 = vpop.f32.mrf.mxu0  ;;  %2285 = vmatpush3.bf16.msra.mxu1 %v1820_v15  ;;  %2286 = vmatprep.mubr.msk.bf16.mxu1 %vm2466_vm0, %v2465_v1 }
 0x3cb   : > { %v1672_v20 = vpack.c.bf16 %v1618_v19, %v1618_v19 }
 0x3cc   : > { %v2253_v21 = vpop.f32.mrf.mxu1  ;;  %v2258_v22 = vpop.f32.mrf.mxu0 }
 0x3cd   : > { %2281 = vmatmul.mubr.msk.bf16.vlgmr.msra.gmra.mxu0 %vm1248_vm3, %v1672_v20 }
 0x3ce   : > { %v1621_v23 = vpop.f32.mrf.mxu0  ;;  %v1664_v24 = vpop.f32.mrf.mxu1 }
 0x3cf   : > { %v1673_v25 = vpack.c.bf16 %v1664_v24, %v1664_v24 }
 0x3d0   : > { %v2259_v26 = vpop.f32.mrf.mxu0  ;;  %v2264_v27 = vpop.f32.mrf.mxu1 }
 0x3d1   : > { %2287 = vmatmul.mubr.msk.bf16.vlgmr.msra.gmra.mxu1 %vm1248_vm3, %v1673_v25 }
 0x3d2   : > { %v1667_v28 = vpop.f32.mrf.mxu1 }
 0x3d4   : > { %v2265_v29 = vpop.f32.mrf.mxu1 }
 0x485   : > { %v1718_v30 = vpop.f32.mrf.mxu0 }
 0x486   : > { %v1862_v38 = vsel %vm504_vm1, %v1718_v30, 0.0 }
 0x487   : > { %v2270_v31 = vpop.f32.mrf.mxu0 }
 0x489   : > { %v1721_v32 = vpop.f32.mrf.mxu0  ;;  %v1764_v33 = vpop.f32.mrf.mxu1 }
 0x48a   : > { %v1863_v35 = vsel %vm504_vm1, %v1764_v33, 0.0 }
 0x48b   : > { %v2271_v1 = vpop.f32.mrf.mxu0  ;;  %v2276_v34 = vpop.f32.mrf.mxu1  ;;  %v1864_v40 = vadd.f32 %v1863_v35, %v1862_v38 }
 0x48d   : > { %v1767_v36 = vpop.f32.mrf.mxu1  ;;  %v1810_v37 = vpop.f32.mrf.mxu0 }
 0x48e   : > { %v1865_v39 = vsel %vm504_vm1, %v1810_v37, 0.0 }
 0x48f   : > { %v2277_v41 = vpop.f32.mrf.mxu1  ;;  %v2282_v42 = vpop.f32.mrf.mxu0  ;;  %v1866_v43 = vadd.f32 %v1865_v39, %v1864_v40 }
 0x491   : > { %v1813_v44 = vpop.f32.mrf.mxu0  ;;  %v1856_v45 = vpop.f32.mrf.mxu1 }
 0x492   : > { %v1867_v46 = vsel %vm504_vm1, %v1856_v45, 0.0 }
 0x493   : > { %v1868_v48 = vadd.f32 %v1867_v46, %v1866_v43  ;;  %v2283_v49 = vpop.f32.mrf.mxu0  ;;  %v2288_v50 = vpop.f32.mrf.mxu1 }
 0x495   : > { %v1876_v51 = vadd.f32 %v2057_v47, %v1868_v48  ;;  %v1859_v52 = vpop.f32.mrf.mxu1 }
 0x497   : > { %v2289_v53 = vpop.f32.mrf.mxu1  ;;  %1877 = vst.msk [vmem:[%s425_s12] sm:$0xff] %vm504_vm1, %v1876_v51 }
 0x498   : > { %2400 = shalt.err (!%p2397_p5)
}
 0x499   : > { %s2401_s13 = scalar_lea.hbm %s2867_s0, 128  ;;  %s2405_s14 = scalar_lea.hbm %s2919_s11, 256 }
 0x49a   : > { %p2402_p6 = scmp.ne.s32.totalorder %s2867_s0, %s2401_s13  ;;  %p2406_p10 = scmp.lt.s32.totalorder %s2867_s0, %s2919_s11 }
 0x49b   : > { %p2407_p11 = scmp.lt.s32.totalorder %s2405_s14, %s2401_s13 }
 0x49c   : > { %p2403_p7 = pnand %p2402_p6, %p2568_p4 }
 0x49d   : > { %p2408_p12 = por %p2407_p11, %p2406_p10 }
 0x49e   : > { %p2404_p9 = pneg %p2403_p7 }
 0x4a0   : > { %p2409_p13 = pnand %p2408_p12, %p2404_p9 }
 0x4a2   : > { %2412 = shalt.err (!%p2409_p13)
}
 0x4a3   : > { %2290 = dma.vmem_to_hbm [thread:$0]  (%p2568_p4), %s1894_s15, 128, %s2867_s0, %s1879_s26  }
 0x4a4 PF: > { %p2296_p0 = scmp.ge.s32.totalorder %s2463_s22, 2  ;;  %s1905_s1 = sand.u32 1, %s2443_s17  }
 0x4a5   : > { %s1906_s28 = scalar_lea.sflag [#allocation5], %s1905_s1 }
 0x4a6   : > { %p2293_p1 = pnand %p2296_p0, %p2575_p8 }
 0x4a8   : > { %p2294_p2 = pneg %p2293_p1 }
 0x4aa   : > { %2438 = dma.done.wait (%p2294_p2), %s1906_s28, 128  }
 0x4ab   : > { %2440 = vsyncadd (%p2294_p2), %s1906_s28, 4294967168  ;;  %s24_s22 = sadd.s32 1, %s2463_s22   ;;  %s2926_s17 = smov %s2447_s18 }
 0x4ac   : > { %p21_p3 = scmp.ge.s32.totalorder %s24_s22, 4   ;;  %s2927_s18 = smov %s2451_s19 }
 0x4ad   : > { %s2928_s19 = smov %s2581_s30  ;;  %s2929_s20 = smov %s2459_s21 }
 0x4ae   : > { %s2930_s21 = smov %s2932_s25  ;;  %23 = sbr.rel (!%p21_p3) target bundleno = 7 (0x7), region = 109 }
 0x4b3   :  { %1911 = vsyncpa [#allocation5], 1 }
 0x4b4   :  { %1913 = vsyncpa [#allocation5 + $0x1], 1 }

</bundles_post_ra>
